<compile_context>
chip_gen: v7x
topology: tpu7x:2x2x1
jax: 0.10.0
libtpu: 0.0.40
codegen_flags: <defaults>
</compile_context>

<pallas_src>
import functools

import jax
import jax.numpy as jnp
from jax.experimental import pallas as pl
from jax.experimental.pallas import tpu as pltpu


def _highpass_kernel(idx_ref, x_ref, o_ref, *, hw, w, h, inv_w):
    # idx_ref: (2, hw) f32 -- row 0: image-row index of each flattened position,
    #                          row 1: flattened position index.
    # x_ref:   (tile_nc, hw) input block  (channels on sublanes, flattened H*W on lanes)
    # o_ref:   (tile_nc, hw) output block
    x = x_ref[...].astype(jnp.float32)
    row = idx_ref[0:1, :]
    pos = idx_ref[1:2, :]

    def tap(v, shift, delta, same_row):
        """`v` rolled by `shift` lanes; keeps only true in-plane neighbours at +-`delta`.

        The validity mask is built by rolling the index rows with the *same* shift, so the
        result is correct regardless of the rotate direction convention.
        """
        shift = shift % hw
        src = pltpu.roll(pos, shift, axis=1)
        ok = jnp.logical_or(src == pos - delta, src == pos + delta)
        if same_row:  # horizontal taps must not cross an image-row boundary
            ok = jnp.logical_and(ok, pltpu.roll(row, shift, axis=1) == row)
        return pltpu.roll(v, shift, axis=1) * ok.astype(jnp.float32)

    # Horizontal 1x3 box sum (zero padding at the left/right image edges).
    if w == 1:
        s = x
    elif hw == 2:                                  # degenerate 1x2 plane: shifts coincide
        s = x + pltpu.roll(x, 1, axis=1)
    else:
        s = x + tap(x, 1, 1, True) + tap(x, hw - 1, 1, True)

    # Vertical 3x1 box sum of s (zero padding at the top/bottom image edges).
    if h == 1:
        box = s
    elif h == 2:                                   # +-W shifts coincide; wrap IS the neighbour
        box = s + pltpu.roll(s, w, axis=1)
    else:
        box = s + tap(s, w, w, False) + tap(s, hw - w, w, False)

    out = 9.0 * x - box
    if inv_w != 1.0:                               # trace-time constant; skipped for w_hpf == 1
        out = out * inv_w
    o_ref[...] = out.astype(o_ref.dtype)


def _vmem_budget_and_limit():
    """Tiling VMEM budget and the explicit Mosaic VMEM limit, derived from the chip."""
    cap = 64 * 1024 * 1024                         # most conservative default (v7x per-TC)
    try:
        cap = int(getattr(pltpu.get_tpu_info(), "vmem_capacity_bytes", cap))
    except Exception:
        pass
    limit = min((cap * 3) // 4, 96 * 1024 * 1024)  # ~48 MiB on v7x, 96 MiB on v5e/v6e
    budget = limit // 2                            # headroom for double buffers + temps
    return budget, limit


def _pick_tile_nc(nc, hw, itemsize, budget):
    """Channel (sublane) tile: dtype-packed, VMEM-bounded, >= 2 grid steps when possible."""
    sub = {4: 8, 2: 16, 1: 32}.get(itemsize, 8)    # native sublane packing multiple
    per_row = 4 * hw * itemsize + 8 * hw * 4       # dbl-buffered in/out + f32 temporaries
    cap = max(sub, (int(budget // per_row) // sub) * sub)
    # TODO(synk): add an H-tiled (1-row halo) path for very large planes whose minimum
    #             (sub x H*W) block no longer fits in VMEM.
    if nc <= sub:
        return nc                                  # tiny channel axis: one full block
    tile = min(cap, (nc // sub) * sub)
    if tile * 2 > nc and nc >= 2 * sub:            # give v7x megacore at least 2 blocks
        tile = max(sub, ((nc // 2) // sub) * sub)
    return tile


def highpass(x, w_hpf: float = 1.0):
    """Depthwise 3x3 high-pass filter; equivalent to the PyTorch HighPass.forward (NCHW)."""
    N, C, H, W = x.shape
    nc, hw = N * C, H * W
    xf = x.reshape(nc, hw)                         # free, contiguous reshape (no transpose)

    ar = jnp.arange(hw, dtype=jnp.int32)
    idx = jnp.stack([(ar // W).astype(jnp.float32),     # image-row index
                     ar.astype(jnp.float32)], axis=0)   # flattened position

    budget, vmem_limit = _vmem_budget_and_limit()
    tile_nc = _pick_tile_nc(nc, hw, x.dtype.itemsize, budget)
    num_blocks = pl.cdiv(nc, tile_nc)

    kernel = functools.partial(_highpass_kernel, hw=hw, w=W, h=H,
                               inv_w=1.0 / float(w_hpf))
    out = pl.pallas_call(
        kernel,
        out_shape=jax.ShapeDtypeStruct((nc, hw), x.dtype),
        grid=(num_blocks,),
        in_specs=[pl.BlockSpec((2, hw), lambda i: (0, 0)),
                  pl.BlockSpec((tile_nc, hw), lambda i: (i, 0))],
        out_specs=pl.BlockSpec((tile_nc, hw), lambda i: (i, 0)),
        compiler_params=pltpu.CompilerParams(
            dimension_semantics=("parallel",),
            vmem_limit_bytes=int(vmem_limit)),
    )(idx, xf)
    return out.reshape(N, C, H, W)


def _reference(x, w_hpf: float = 1.0):
    """Pure-JAX reference matching torch F.conv2d(x, filt, padding=1, groups=C)."""
    N, C, H, W = x.shape
    filt = jnp.array([[-1.0, -1.0, -1.0],
                      [-1.0, 8.0, -1.0],
                      [-1.0, -1.0, -1.0]], dtype=x.dtype) / w_hpf
    kern = jnp.tile(filt[None, None, :, :], (C, 1, 1, 1))  # (C, 1, 3, 3), OIHW
    return jax.lax.conv_general_dilated(
        x, kern,
        window_strides=(1, 1),
        padding=((1, 1), (1, 1)),
        dimension_numbers=("NCHW", "OIHW", "NCHW"),
        feature_group_count=C,
    )


if __name__ == "__main__":
    key = jax.random.PRNGKey(0)
    N, C, H, W = 2, 4, 16, 16
    x = jax.random.normal(key, (N, C, H, W), dtype=jnp.float32)
    w_hpf = 1.0  # fixed buffer scale from __init__

    y = jax.block_until_ready(highpass(x, w_hpf))

    y_ref = _reference(x, w_hpf)
    assert y.shape == (N, C, H, W)
    assert jnp.allclose(y, y_ref, atol=1e-4, rtol=1e-4), "mismatch vs conv reference"

    print("KERNEL_OK")
</pallas_src>

<mosaic_0001>
module attributes {stable_mosaic.version = 11 : i64} {
  func.func @_highpass_kernel(%arg0: i32, %arg1: memref<2x256xf32, #tpu.memory_space<vmem>>, %arg2: memref<8x256xf32, #tpu.memory_space<vmem>>, %arg3: memref<8x256xf32, #tpu.memory_space<vmem>>) attributes {dimension_semantics = [#tpu.dimension_semantics<parallel>], iteration_bounds = array<i64: 1>, scalar_prefetch = 0 : i64, scratch_operands = 0 : i64, tpu.core_type = #tpu.core_type<tc>, window_params = [{pipeline_mode = #tpu.pipeline_mode<synchronous>, transform_indices = @transform_0, window_bounds = array<i64: 2, 256>}, {transform_indices = @transform_1, window_bounds = array<i64: 8, 256>}, {transform_indices = @transform_2, window_bounds = array<i64: 8, 256>}]} {
    %c0 = arith.constant 0 : index
    %c0_0 = arith.constant 0 : index
    %0 = vector.load %arg2[%c0, %c0_0] : memref<8x256xf32, #tpu.memory_space<vmem>>, vector<8x256xf32>
    %c0_1 = arith.constant 0 : index
    %c0_2 = arith.constant 0 : index
    %1 = vector.load %arg1[%c0_1, %c0_2] : memref<2x256xf32, #tpu.memory_space<vmem>>, vector<1x256xf32>
    %c1 = arith.constant 1 : index
    %c0_3 = arith.constant 0 : index
    %2 = vector.load %arg1[%c1, %c0_3] : memref<2x256xf32, #tpu.memory_space<vmem>>, vector<1x256xf32>
    %c1_i32 = arith.constant 1 : i32
    %3 = tpu.dynamic_rotate %2 by %c1_i32 dim 1 : vector<1x256xf32>, i32 -> vector<1x256xf32>
    %cst = arith.constant 1.000000e+00 : f32
    %4 = vector.broadcast %cst : f32 to vector<1x256xf32>
    %5 = arith.subf %2, %4 : vector<1x256xf32>
    %6 = arith.cmpf oeq, %3, %5 : vector<1x256xf32>
    %cst_4 = arith.constant 1.000000e+00 : f32
    %7 = vector.broadcast %cst_4 : f32 to vector<1x256xf32>
    %8 = arith.addf %2, %7 : vector<1x256xf32>
    %9 = arith.cmpf oeq, %3, %8 : vector<1x256xf32>
    %10 = arith.ori %6, %9 : vector<1x256xi1>
    %c1_i32_5 = arith.constant 1 : i32
    %11 = tpu.dynamic_rotate %1 by %c1_i32_5 dim 1 : vector<1x256xf32>, i32 -> vector<1x256xf32>
    %12 = arith.cmpf oeq, %11, %1 : vector<1x256xf32>
    %13 = arith.andi %10, %12 : vector<1x256xi1>
    %c1_i32_6 = arith.constant 1 : i32
    %14 = tpu.dynamic_rotate %0 by %c1_i32_6 dim 1 : vector<8x256xf32>, i32 -> vector<8x256xf32>
    %15 = arith.extui %13 : vector<1x256xi1> to vector<1x256xi32>
    %16 = arith.sitofp %15 : vector<1x256xi32> to vector<1x256xf32>
    %17 = vector.broadcast %16 : vector<1x256xf32> to vector<8x256xf32>
    %18 = arith.mulf %14, %17 : vector<8x256xf32>
    %19 = arith.addf %0, %18 : vector<8x256xf32>
    %c255_i32 = arith.constant 255 : i32
    %20 = tpu.dynamic_rotate %2 by %c255_i32 dim 1 : vector<1x256xf32>, i32 -> vector<1x256xf32>
    %cst_7 = arith.constant 1.000000e+00 : f32
    %21 = vector.broadcast %cst_7 : f32 to vector<1x256xf32>
    %22 = arith.subf %2, %21 : vector<1x256xf32>
    %23 = arith.cmpf oeq, %20, %22 : vector<1x256xf32>
    %cst_8 = arith.constant 1.000000e+00 : f32
    %24 = vector.broadcast %cst_8 : f32 to vector<1x256xf32>
    %25 = arith.addf %2, %24 : vector<1x256xf32>
    %26 = arith.cmpf oeq, %20, %25 : vector<1x256xf32>
    %27 = arith.ori %23, %26 : vector<1x256xi1>
    %c255_i32_9 = arith.constant 255 : i32
    %28 = tpu.dynamic_rotate %1 by %c255_i32_9 dim 1 : vector<1x256xf32>, i32 -> vector<1x256xf32>
    %29 = arith.cmpf oeq, %28, %1 : vector<1x256xf32>
    %30 = arith.andi %27, %29 : vector<1x256xi1>
    %c255_i32_10 = arith.constant 255 : i32
    %31 = tpu.dynamic_rotate %0 by %c255_i32_10 dim 1 : vector<8x256xf32>, i32 -> vector<8x256xf32>
    %32 = arith.extui %30 : vector<1x256xi1> to vector<1x256xi32>
    %33 = arith.sitofp %32 : vector<1x256xi32> to vector<1x256xf32>
    %34 = vector.broadcast %33 : vector<1x256xf32> to vector<8x256xf32>
    %35 = arith.mulf %31, %34 : vector<8x256xf32>
    %36 = arith.addf %19, %35 : vector<8x256xf32>
    %c16_i32 = arith.constant 16 : i32
    %37 = tpu.dynamic_rotate %2 by %c16_i32 dim 1 : vector<1x256xf32>, i32 -> vector<1x256xf32>
    %cst_11 = arith.constant 1.600000e+01 : f32
    %38 = vector.broadcast %cst_11 : f32 to vector<1x256xf32>
    %39 = arith.subf %2, %38 : vector<1x256xf32>
    %40 = arith.cmpf oeq, %37, %39 : vector<1x256xf32>
    %cst_12 = arith.constant 1.600000e+01 : f32
    %41 = vector.broadcast %cst_12 : f32 to vector<1x256xf32>
    %42 = arith.addf %2, %41 : vector<1x256xf32>
    %43 = arith.cmpf oeq, %37, %42 : vector<1x256xf32>
    %44 = arith.ori %40, %43 : vector<1x256xi1>
    %c16_i32_13 = arith.constant 16 : i32
    %45 = tpu.dynamic_rotate %36 by %c16_i32_13 dim 1 : vector<8x256xf32>, i32 -> vector<8x256xf32>
    %46 = arith.extui %44 : vector<1x256xi1> to vector<1x256xi32>
    %47 = arith.sitofp %46 : vector<1x256xi32> to vector<1x256xf32>
    %48 = vector.broadcast %47 : vector<1x256xf32> to vector<8x256xf32>
    %49 = arith.mulf %45, %48 : vector<8x256xf32>
    %50 = arith.addf %36, %49 : vector<8x256xf32>
    %c240_i32 = arith.constant 240 : i32
    %51 = tpu.dynamic_rotate %2 by %c240_i32 dim 1 : vector<1x256xf32>, i32 -> vector<1x256xf32>
    %cst_14 = arith.constant 1.600000e+01 : f32
    %52 = vector.broadcast %cst_14 : f32 to vector<1x256xf32>
    %53 = arith.subf %2, %52 : vector<1x256xf32>
    %54 = arith.cmpf oeq, %51, %53 : vector<1x256xf32>
    %cst_15 = arith.constant 1.600000e+01 : f32
    %55 = vector.broadcast %cst_15 : f32 to vector<1x256xf32>
    %56 = arith.addf %2, %55 : vector<1x256xf32>
    %57 = arith.cmpf oeq, %51, %56 : vector<1x256xf32>
    %58 = arith.ori %54, %57 : vector<1x256xi1>
    %c240_i32_16 = arith.constant 240 : i32
    %59 = tpu.dynamic_rotate %36 by %c240_i32_16 dim 1 : vector<8x256xf32>, i32 -> vector<8x256xf32>
    %60 = arith.extui %58 : vector<1x256xi1> to vector<1x256xi32>
    %61 = arith.sitofp %60 : vector<1x256xi32> to vector<1x256xf32>
    %62 = vector.broadcast %61 : vector<1x256xf32> to vector<8x256xf32>
    %63 = arith.mulf %59, %62 : vector<8x256xf32>
    %64 = arith.addf %50, %63 : vector<8x256xf32>
    %cst_17 = arith.constant 9.000000e+00 : f32
    %65 = vector.broadcast %cst_17 : f32 to vector<8x256xf32>
    %66 = arith.mulf %65, %0 : vector<8x256xf32>
    %67 = arith.subf %66, %64 : vector<8x256xf32>
    %c0_18 = arith.constant 0 : index
    %c0_19 = arith.constant 0 : index
    %68 = vector.load %arg3[%c0_18, %c0_19] : memref<8x256xf32, #tpu.memory_space<vmem>>, vector<8x256xf32>
    tpu.vector_store %arg3[%c0_18, %c0_19], %67 {strides = array<i32>} : memref<8x256xf32, #tpu.memory_space<vmem>>, vector<8x256xf32>,
    return
  }
  func.func @transform_0(%arg0: i32) -> (i32, i32) {
    %c0_i32 = arith.constant 0 : i32
    %c0_i32_0 = arith.constant 0 : i32
    %c0_i32_1 = arith.constant 0 : i32
    return %c0_i32, %c0_i32_0 : i32, i32
  }
  func.func @transform_1(%arg0: i32) -> (i32, i32) {
    %c0_i32 = arith.constant 0 : i32
    %c0_i32_0 = arith.constant 0 : i32
    return %arg0, %c0_i32 : i32, i32
  }
  func.func @transform_2(%arg0: i32) -> (i32, i32) {
    %c0_i32 = arith.constant 0 : i32
    %c0_i32_0 = arith.constant 0 : i32
    return %arg0, %c0_i32 : i32, i32
  }
}

</mosaic_0001>

<bundles_post_ra>
// kernel: tpu_custom_call.1
= control target key start
LH: loop header
LB: loop body
LE: loop exit
PB: predicated region body
PF: predicated region fallthrough
CT: control target
= control target key end

     0   :  { %7 = vsyncpa [#allocation3], 0  ;;  %s554_s0 = inlined_call_operand.hbm [shape: f32[2,256], index: 0, kind: input, shape index: {}]   ;;  %s555_s1 = inlined_call_operand.hbm [shape: f32[8,256], index: 1, kind: input, shape index: {}]   ;;  %s556_s2 = inlined_call_operand.hbm [shape: f32[8,256], index: 2, kind: output, shape index: {}]  }
   0x1   :  { %8 = vsyncpa [#allocation6], 0 }
   0x2   :  { %9 = vsyncpa [#allocation4], 0  ;;  %s385_s9 = smov [#allocation2]   ;;  %s386_s11 = smov [#allocation5]  }
   0x3   :  { %s16_s10 = sshll.u32 %s385_s9, 4  ;;  %s26_s12 = sshll.u32 %s386_s11, 4  ;;  %s17_s10 = int_to_ptr.vmem [resolvable:$true] %s16_s10  ;;  %s27_s12 = int_to_ptr.vmem [resolvable:$true] %s26_s12 }
   0x4   :  { %s313_s15 = scalar_lea.hbm %s554_s0, 64 }
   0x5   :  { %p314_p0 = scmp.ne.s32.totalorder %s554_s0, %s313_s15  ;;  %p317_p1 = scmp.lt.u32.totalorder %s313_s15, %s554_s0 }
   0x7   :  { %p319_p2 = pnand %p317_p1, %p314_p0 }
   0x9   :  { %322 = shalt.err (!%p319_p2)
}
   0xa   :  { %s323_s20 = scalar_lea.vmem %s17_s10, 64  ;;  %p328_p4 = scmp.lt.s32.totalorder %s17_s10, %s17_s10 }
   0xb   :  { %p324_p3 = scmp.ne.s32.totalorder %s17_s10, %s323_s20  ;;  %p329_p5 = scmp.lt.s32.totalorder %s323_s20, %s323_s20 }
   0xd   :  { %p330_p6 = por %p329_p5, %p328_p4 }
   0xf   :  { %p331_p7 = pnand %p330_p6, %p324_p3 }
  0x11   :  { %334 = shalt.err (!%p331_p7)
}
  0x12   :  { %19 = dma.hbm_to_vmem [thread:$0]  %s554_s0, 64, %s17_s10, [#allocation3]  }
  0x13   :  { %s335_s25 = scalar_lea.hbm %s555_s1, 256 }
  0x14   :  { %p336_p8 = scmp.ne.s32.totalorder %s555_s1, %s335_s25  ;;  %p339_p9 = scmp.lt.u32.totalorder %s335_s25, %s555_s1 }
  0x16   :  { %p341_p10 = pnand %p339_p9, %p336_p8 }
  0x18   :  { %344 = shalt.err (!%p341_p10)
}
  0x19   :  { %s345_s30 = scalar_lea.vmem %s27_s12, 256  ;;  %p350_p12 = scmp.lt.s32.totalorder %s27_s12, %s27_s12 }
  0x1a   :  { %p346_p11 = scmp.ne.s32.totalorder %s27_s12, %s345_s30  ;;  %p351_p13 = scmp.lt.s32.totalorder %s345_s30, %s345_s30 }
  0x1c   :  { %p352_p0 = por %p351_p13, %p350_p12 }
  0x1e   :  { %p353_p1 = pnand %p352_p0, %p346_p11 }
  0x20   :  { %356 = shalt.err (!%p353_p1)
}
  0x21   :  { %29 = dma.hbm_to_vmem [thread:$0]  %s555_s1, 256, %s27_s12, [#allocation6]  }
  0x22   :  { %379 = dma.done.wait [#allocation3], 64  }
  0x23   :  { %380 = vsyncadd [#allocation3], 4294967232 }
  0x24   :  { %381 = dma.done.wait [#allocation6], 256  }
  0x25   :  { %382 = vsyncadd [#allocation6], 4294967040  ;;  %v42_v0 = vlaneseq  ;;  %v40_v4 = vld [vmem:[#allocation2 + $0x1] ss:$2 sm:$0x3]  ;;  %s387_s4 = smov 1  }
  0x26   :  { %v38_v5 = vld [vmem:[#allocation2] ss:$2 sm:$0x3]  ;;  %v295_v8 = vadd.f32 -1.0, %v40_v4  ;;  %v75_v9 = vadd.f32 1.0, %v40_v4  ;;  %s388_s1 = smov 127  }
  0x27   :  { %v43_v1 = vshrl.u32 %v42_v0, 7  ;;  %v444_v14 = vld [vmem:[#allocation5 + $0x8] sm:$0xff]  ;;  %v446_v15 = vld [vmem:[#allocation5] sm:$0xff]  ;;  %v450_v16 = vadd.f32 -16.0, %v40_v4  ;;  %v452_v17 = vadd.f32 16.0, %v40_v4  ;;  %s389_s5 = smov 16  }
  0x28   :  { %s390_s6 = smov 112   ;;  %v466_v20 = vand.u32 127, %v42_v0  ;;  %v391_v37 = vmov 0.0   ;;  %s392_s7 = smov [#allocation7]  }
  0x29   :  { %v432_v2 = vsub.s32 0, %v43_v1  ;;  %v48_v3 = vsub.s32 1, %v43_v1  ;;  %s285_s8 = sshll.u32 %s392_s7, 4  ;;  %s286_s8 = int_to_ptr.vmem [resolvable:$true] %s285_s8 }
  0x2a   :  { %vm58_vm0 = vcmp.lt.s32.totalorder %v466_v20, 1  ;;  %vm138_vm1 = vcmp.lt.s32.totalorder %v466_v20, 127  ;;  %s357_s9 = scalar_lea.vmem %s286_s8, 256  ;;  %p362_p3 = scmp.lt.s32.totalorder %s286_s8, %s286_s8 }
  0x2b   :  { %v45_v6 = vrot.slane %v40_v4, %v432_v2  ;;  %v436_v7 = vrot.slane %v38_v5, %v432_v2  ;;  %v49_v10 = vrot.slane %v40_v4, %v48_v3  ;;  %v439_v11 = vrot.slane %v38_v5, %v48_v3  ;;  %p358_p2 = scmp.ne.s32.totalorder %s286_s8, %s357_s9  ;;  %p363_p4 = scmp.lt.s32.totalorder %s357_s9, %s357_s9 }
  0x2c   :  { %v70_v12 = vrot.slane %v295_v8, %v48_v3  ;;  %v84_v13 = vrot.slane %v75_v9, %v48_v3  ;;  %v455_v18 = vrot.slane %v450_v16, %v48_v3  ;;  %v458_v19 = vrot.slane %v452_v17, %v48_v3 }
  0x2d   :  { %52 = vrot.lane.b32.xlu0 %v45_v6, %s387_s4  ;;  %102 = vrot.lane.b32.xlu1 %v436_v7, %s387_s4  ;;  %v66_v23 = vrot.slane %v295_v8, %v432_v2  ;;  %v80_v24 = vrot.slane %v75_v9, %v432_v2  ;;  %v191_v58 = vrot.slane %v450_v16, %v432_v2  ;;  %p364_p5 = por %p363_p4, %p362_p3 }
  0x2e   :  { %v205_v59 = vrot.slane %v452_v17, %v432_v2 }
  0x2f   :  { %p365_p6 = pnand %p364_p5, %p358_p2 }
  0x31   :  { %54 = vrot.lane.b32.xlu0 %v49_v10, %s387_s4  ;;  %104 = vrot.lane.b32.xlu1 %v439_v11, %s387_s4 }
  0x35   :  { %134 = vrot.lane.b32.xlu0 %v45_v6, %s388_s1  ;;  %136 = vrot.lane.b32.xlu1 %v49_v10, %s388_s1 }
  0x39   :  { %147 = vrot.lane.b32.xlu0 %v436_v7, %s388_s1  ;;  %149 = vrot.lane.b32.xlu1 %v439_v11, %s388_s1 }
  0x3d   :  { %114 = vrot.lane.b32.xlu1 %v444_v14, %s387_s4  ;;  %112 = vrot.lane.b32.xlu0 %v446_v15, %s387_s4 }
  0x41   :  { %159 = vrot.lane.b32.xlu1 %v444_v14, %s388_s1  ;;  %157 = vrot.lane.b32.xlu0 %v446_v15, %s388_s1 }
  0x45   :  { %181 = vrot.lane.b32.xlu1 %v49_v10, %s389_s5  ;;  %179 = vrot.lane.b32.xlu0 %v45_v6, %s389_s5 }
  0x49   :  { %240 = vrot.lane.b32.xlu1 %v49_v10, %s390_s6  ;;  %238 = vrot.lane.b32.xlu0 %v45_v6, %s390_s6 }
  0x9f   :  { %v53_v21 = vpop.permute.xlu0 %52  ;;  %v103_v22 = vpop.permute.xlu1 %102 }
  0xa3   :  { %v55_v25 = vpop.permute.xlu0 %54  ;;  %v105_v26 = vpop.permute.xlu1 %104 }
  0xa4   :  { %v59_v27 = vsel %vm58_vm0, %v53_v21, %v55_v25  ;;  %v60_v28 = vsel %vm58_vm0, %v55_v25, %v53_v21  ;;  %v106_v29 = vsel %vm58_vm0, %v103_v22, %v105_v26  ;;  %v107_v30 = vsel %vm58_vm0, %v105_v26, %v103_v22 }
  0xa5   :  { %vm73_vm2 = vcmp.eq.f32.partialorder %v60_v28, %v66_v23  ;;  %vm74_vm3 = vcmp.eq.f32.partialorder %v59_v27, %v70_v12  ;;  %vm87_vm4 = vcmp.eq.f32.partialorder %v60_v28, %v80_v24  ;;  %vm88_vm5 = vcmp.eq.f32.partialorder %v59_v27, %v84_v13 }
  0xa6   :  { %vm89_vm6 = vmor %vm73_vm2, %vm87_vm4  ;;  %vm108_vm7 = vcmp.eq.f32.partialorder %v107_v30, %v436_v7  ;;  %vm109_vm8 = vcmp.eq.f32.partialorder %v106_v29, %v439_v11 }
  0xa7   :  { %vm90_vm9 = vmor %vm74_vm3, %vm88_vm5  ;;  %v135_v31 = vpop.permute.xlu0 %134  ;;  %v137_v32 = vpop.permute.xlu1 %136 }
  0xa8   :  { %vm110_vm10 = vmand %vm89_vm6, %vm108_vm7  ;;  %v139_v33 = vsel %vm138_vm1, %v135_v31, %v137_v32  ;;  %v140_v34 = vsel %vm138_vm1, %v137_v32, %v135_v31  ;;  %v273_v32 = vmul.f32 9.0, %v446_v15 }
  0xa9   :  { %vm111_vm11 = vmand %vm90_vm9, %vm109_vm8  ;;  %vm141_vm12 = vcmp.eq.f32.partialorder %v139_v33, %v66_v23  ;;  %vm142_vm13 = vcmp.eq.f32.partialorder %v140_v34, %v70_v12  ;;  %vm143_vm14 = vcmp.eq.f32.partialorder %v139_v33, %v80_v24  ;;  %vm144_vm15 = vcmp.eq.f32.partialorder %v140_v34, %v84_v13 }
  0xaa   :  { %vm145_vm2 = vmor %vm141_vm12, %vm143_vm14  ;;  %v296_v38 = vsel %vm110_vm10, 1.0, %v391_v37  ;;  %v297_v39 = vsel %vm111_vm11, 1.0, %v391_v37  ;;  %vm183_vm8 = vcmp.lt.s32.totalorder %v466_v20, 16  ;;  %vm242_vm10 = vcmp.lt.s32.totalorder %v466_v20, 112 }
  0xab   :  { %vm146_vm4 = vmor %vm142_vm13, %vm144_vm15  ;;  %v148_v35 = vpop.permute.xlu0 %147  ;;  %v150_v36 = vpop.permute.xlu1 %149  ;;  %v125_v43 = vrot.slane %v296_v38, %v432_v2  ;;  %v129_v44 = vrot.slane %v297_v39, %v432_v2  ;;  %v274_v33 = vmul.f32 9.0, %v444_v14 }
  0xac   :  { %v151_v40 = vsel %vm138_vm1, %v148_v35, %v150_v36  ;;  %v152_v41 = vsel %vm138_vm1, %v150_v36, %v148_v35 }
  0xad   :  { %vm153_vm3 = vcmp.eq.f32.partialorder %v151_v40, %v436_v7  ;;  %vm154_vm5 = vcmp.eq.f32.partialorder %v152_v41, %v439_v11 }
  0xae   :  { %vm155_vm6 = vmand %vm145_vm2, %vm153_vm3 }
  0xaf   :  { %vm156_vm7 = vmand %vm146_vm4, %vm154_vm5  ;;  %v115_v42 = vpop.permute.xlu1 %114  ;;  %v113_v45 = vpop.permute.xlu0 %112  ;;  %v298_v46 = vsel %vm155_vm6, 1.0, %v391_v37 }
  0xb0   :  { %v299_v47 = vsel %vm156_vm7, 1.0, %v391_v37  ;;  %v116_v48 = vsel %vm58_vm0, %v113_v45, %v115_v42  ;;  %v117_v49 = vsel %vm58_vm0, %v115_v42, %v113_v45  ;;  %v170_v53 = vrot.slane %v298_v46, %v432_v2 }
  0xb1   :  { %v130_v50 = vmul.f32 %v125_v43, %v117_v49  ;;  %v131_v51 = vmul.f32 %v129_v44, %v116_v48  ;;  %v174_v54 = vrot.slane %v299_v47, %v432_v2 }
  0xb3   :  { %v160_v52 = vpop.permute.xlu1 %159  ;;  %v158_v55 = vpop.permute.xlu0 %157  ;;  %v132_v60 = vadd.f32 %v130_v50, %v446_v15  ;;  %v133_v61 = vadd.f32 %v131_v51, %v444_v14 }
  0xb4   :  { %v161_v56 = vsel %vm138_vm1, %v158_v55, %v160_v52  ;;  %v162_v57 = vsel %vm138_vm1, %v160_v52, %v158_v55 }
  0xb5   :  { %v175_v62 = vmul.f32 %v170_v53, %v161_v56  ;;  %v176_v63 = vmul.f32 %v174_v54, %v162_v57 }
  0xb7   :  { %v178_v0 = vadd.f32 %v176_v63, %v133_v61  ;;  %v177_v1 = vadd.f32 %v175_v62, %v132_v60  ;;  %v182_v3 = vpop.permute.xlu1 %181  ;;  %v180_v4 = vpop.permute.xlu0 %179 }
  0xb8   :  { %v184_v5 = vsel %vm183_vm8, %v180_v4, %v182_v3  ;;  %v185_v6 = vsel %vm183_vm8, %v182_v3, %v180_v4 }
  0xb9   :  { %218 = vrot.lane.b32.xlu1 %v178_v0, %s389_s5  ;;  %216 = vrot.lane.b32.xlu0 %v177_v1, %s389_s5  ;;  %vm198_vm0 = vcmp.eq.f32.partialorder %v185_v6, %v191_v58  ;;  %vm199_vm1 = vcmp.eq.f32.partialorder %v184_v5, %v455_v18  ;;  %vm212_vm9 = vcmp.eq.f32.partialorder %v185_v6, %v205_v59 }
  0xba   :  { %vm213_vm11 = vcmp.eq.f32.partialorder %v184_v5, %v458_v19  ;;  %vm214_vm12 = vmor %vm198_vm0, %vm212_vm9 }
  0xbb   :  { %vm215_vm13 = vmor %vm199_vm1, %vm213_vm11  ;;  %v301_v7 = vsel %vm214_vm12, 1.0, %v391_v37  ;;  %v241_v8 = vpop.permute.xlu1 %240  ;;  %v239_v9 = vpop.permute.xlu0 %238 }
  0xbc   :  { %v302_v10 = vsel %vm215_vm13, 1.0, %v391_v37  ;;  %v243_v11 = vsel %vm242_vm10, %v239_v9, %v241_v8  ;;  %v244_v12 = vsel %vm242_vm10, %v241_v8, %v239_v9  ;;  %v229_v21 = vrot.slane %v301_v7, %v432_v2 }
  0xbd   :  { %253 = vrot.lane.b32.xlu1 %v178_v0, %s390_s6  ;;  %251 = vrot.lane.b32.xlu0 %v177_v1, %s390_s6  ;;  %vm245_vm14 = vcmp.eq.f32.partialorder %v243_v11, %v191_v58  ;;  %vm246_vm15 = vcmp.eq.f32.partialorder %v244_v12, %v455_v18  ;;  %vm247_vm2 = vcmp.eq.f32.partialorder %v243_v11, %v205_v59 }
  0xbe   :  { %vm248_vm4 = vcmp.eq.f32.partialorder %v244_v12, %v458_v19  ;;  %vm249_vm3 = vmor %vm245_vm14, %vm247_vm2  ;;  %v233_v22 = vrot.slane %v302_v10, %v432_v2 }
  0xbf   :  { %vm250_vm5 = vmor %vm246_vm15, %vm248_vm4  ;;  %v303_v13 = vsel %vm249_vm3, 1.0, %v391_v37 }
  0xc0   :  { %v304_v16 = vsel %vm250_vm5, 1.0, %v391_v37  ;;  %v264_v19 = vrot.slane %v303_v13, %v432_v2 }
  0xc1   :  { %v268_v28 = vrot.slane %v304_v16, %v432_v2 }
 0x12b   :  { %v219_v17 = vpop.permute.xlu1 %218  ;;  %v217_v23 = vpop.permute.xlu0 %216 }
 0x12c   :  { %v220_v24 = vsel %vm183_vm8, %v217_v23, %v219_v17  ;;  %v221_v25 = vsel %vm183_vm8, %v219_v17, %v217_v23 }
 0x12d   :  { %v234_v18 = vmul.f32 %v229_v21, %v221_v25  ;;  %v235_v26 = vmul.f32 %v233_v22, %v220_v24 }
 0x12f   :  { %v254_v27 = vpop.permute.xlu1 %253  ;;  %v252_v29 = vpop.permute.xlu0 %251  ;;  %v236_v34 = vadd.f32 %v234_v18, %v177_v1  ;;  %v237_v35 = vadd.f32 %v235_v26, %v178_v0 }
 0x130   :  { %v255_v30 = vsel %vm242_vm10, %v252_v29, %v254_v27  ;;  %v256_v31 = vsel %vm242_vm10, %v254_v27, %v252_v29 }
 0x131   :  { %v269_v36 = vmul.f32 %v264_v19, %v255_v30  ;;  %v270_v37 = vmul.f32 %v268_v28, %v256_v31 }
 0x133   :  { %v271_v38 = vadd.f32 %v269_v36, %v236_v34  ;;  %v272_v39 = vadd.f32 %v270_v37, %v237_v35 }
 0x135   :  { %v275_v2 = vsub.f32 %v273_v32, %v271_v38  ;;  %v276_v40 = vsub.f32 %v274_v33, %v272_v39 }
 0x137   :  { %277 = vst [vmem:[#allocation7] sm:$0xff] %v275_v2  ;;  %278 = vst [vmem:[#allocation7 + $0x8] sm:$0xff] %v276_v40 }
 0x138   :  { %368 = shalt.err (!%p365_p6)
}
 0x139   :  { %s369_s12 = scalar_lea.hbm %s556_s2, 256 }
 0x13a   :  { %p370_p7 = scmp.ne.s32.totalorder %s556_s2, %s369_s12  ;;  %p373_p8 = scmp.lt.u32.totalorder %s369_s12, %s556_s2 }
 0x13c   :  { %p375_p9 = pnand %p373_p8, %p370_p7 }
 0x13e   :  { %378 = shalt.err (!%p375_p9)
}
 0x13f   :  { %288 = dma.vmem_to_hbm [thread:$0]  %s286_s8, 256, %s556_s2, [#allocation4]  }
 0x140   :  { %383 = dma.done.wait [#allocation4], 256  }
 0x141   :  { %384 = vsyncadd [#allocation4], 4294967040 }
 0x142   :  { %292 = vsyncpa [#allocation3], 1 }
 0x143   :  { %293 = vsyncpa [#allocation6], 1 }
 0x144   :  { %294 = vsyncpa [#allocation4], 1 }

</bundles_post_ra>
